<compile_context>
chip_gen: v7x
topology: tpu7x:2x2x1
jax: 0.10.0
libtpu: 0.0.40
codegen_flags: <defaults>
</compile_context>

<pallas_src>
import functools

import jax
import jax.numpy as jnp
from jax import lax
from jax.experimental import pallas as pl
from jax.experimental.pallas import tpu as pltpu


# ---------------------------------------------------------------------------
# Kernel 1: furthest point sampling (per batch element).
# Sequential FPS (idx[0]=0, then argmax of the running min-distance).  The
# selected centroid is carried in the loop state; both the sampled coordinates
# (3, M) and the sampled indices (M, 1) are recorded.
# ---------------------------------------------------------------------------
def _fps_kernel(coords_ref, fpsc_ref, fidx_ref):
    # coords: (1, 3, N) ; fpsc: (1, 3, M) ; fidx: (1, M, 1) int32
    c = coords_ref[0]                                       # (3, N)
    D, N = c.shape
    M = fpsc_ref.shape[2]

    lane_n = lax.broadcasted_iota(jnp.int32, (1, N), 1)     # point id (lanes)
    lane_m = lax.broadcasted_iota(jnp.int32, (1, M), 1)     # slot id (lanes)
    sub_m = lax.broadcasted_iota(jnp.int32, (M, 1), 0)      # slot id (sublanes)

    def centroid_of(idx):
        onehot = (lane_n == idx).astype(c.dtype)            # (1, N)
        return jnp.sum(c * onehot, axis=1, keepdims=True)   # (3, 1)

    cent0 = centroid_of(0)                                  # FPS seed: index 0
    fc0 = jnp.where(lane_m == 0, cent0, jnp.zeros((D, M), c.dtype))
    fi0 = jnp.zeros((M, 1), jnp.int32)
    mind0 = jnp.full((1, N), 1e10, dtype=jnp.float32)

    def body(i, carry):
        mind, cent, fc, fi = carry
        d = jnp.sum((c - cent) ** 2, axis=0, keepdims=True)       # (1, N)
        mind = jnp.minimum(mind, d)
        maxv = jnp.max(mind)                                      # scalar
        far = jnp.min(jnp.where(mind >= maxv, lane_n, jnp.int32(N)))
        cent = centroid_of(far)            # extracted ONCE per step (carried)
        fc = jnp.where(lane_m == i, cent, fc)                     # (3, M)
        fi = jnp.where(sub_m == i, far, fi)                       # (M, 1)
        return mind, cent, fc, fi

    # Keep the sequential loop rolled: full unroll explodes code size / vreg
    # live ranges at production M (256-1024).
    _, _, fc, fi = lax.fori_loop(1, M, body, (mind0, cent0, fc0, fi0))
    fpsc_ref[0, :, :] = fc
    fidx_ref[0, :, :] = fi


# ---------------------------------------------------------------------------
# Kernel 2: fused  pointwise-MLP  +  k-NN selection  +  max-pool over k,
# tiled over (batch, M//TM).  Because the conv is 1x1 (pointwise),
# mlp(gather(x)) == gather(mlp(x)); the MLP is computed once per input point
# and the neighbour gather is k one-hot MXU matmuls (bf16 fast path).
# ---------------------------------------------------------------------------
def _knn_mlp_max_kernel(w_ref, scale_ref, shift_ref, x_ref, coords_ref,
                        fidx_ref, y_ref, *, k, mxu_bf16):
    # w: (Co, Ci), scale/shift: (Co, 1), x: (1, Ci, N), coords: (1, 3, N),
    # fidx: (1, TM, 1) int32 FPS indices for this tile, y: (1, Co, TM)
    w = w_ref[...]                                   # (Co, Ci)
    x = x_ref[0]                                     # (Ci, N)
    q = coords_ref[0]                                # (3, N)
    idx_col = fidx_ref[0]                            # (TM, 1)
    co = w.shape[0]
    N = q.shape[1]
    TM = idx_col.shape[0]

    # 1x1 Conv2d(bias=False) + folded eval BatchNorm2d + ReLU over all input
    # points.  bf16 operands keep the MXU on its native fast path (f32 acc).
    if mxu_bf16:
        f = jnp.dot(w.astype(jnp.bfloat16), x.astype(jnp.bfloat16),
                    preferred_element_type=jnp.float32)
    else:
        f = jnp.dot(w, x, preferred_element_type=jnp.float32)
    f = jnp.maximum(f * scale_ref[...] + shift_ref[...], 0.0)     # (Co, N) f32
    fg = f.astype(jnp.bfloat16) if mxu_bf16 else f   # gather operand
    # (bf16 gather rounds the gathered features to bf16; set mxu_bf16=False
    #  for exact f32 one-hot gathers.)

    # Gather this tile's sampled centers from coords with an exact f32
    # one-hot matmul driven by the FPS indices (no transposed coordinate
    # tensor round-trips through HBM between the two kernels).
    lane_n = lax.broadcasted_iota(jnp.int32, (TM, N), 1)
    onehot_c = (lane_n == idx_col).astype(jnp.float32)            # (TM, N)
    ptT = lax.dot_general(onehot_c, q, (((1,), (1,)), ((), ())),
                          preferred_element_type=jnp.float32)     # (TM, 3)

    # pairwise squared distances, this center tile vs all points: (TM, N)
    pn = jnp.sum(ptT * ptT, axis=1, keepdims=True)                # (TM, 1)
    qn = jnp.sum(q * q, axis=0, keepdims=True)                    # (1, N)
    cross = jnp.dot(ptT, q, preferred_element_type=jnp.float32)   # (TM, N)
    dist = jnp.maximum(pn + qn - 2.0 * cross, 0.0)

    # Pack (distance, point index) into one int32 key: for non-negative f32
    # the bit pattern is monotone as int32, so a SINGLE per-row min yields the
    # nearest remaining neighbour and its index (ties -> smallest index).  The
    # low ceil(log2(N)) mantissa bits only affect near-tie ordering.
    idx_bits = max(1, (N - 1).bit_length())
    idx_mask = jnp.int32((1 << idx_bits) - 1)
    inv_mask = jnp.int32(-(1 << idx_bits))
    keys0 = (pltpu.bitcast(dist, jnp.int32) & inv_mask) | lane_n
    excluded = jnp.int32(2**31 - 1)

    def body(j, carry):
        keys, acc = carry
        kmin = jnp.min(keys, axis=1, keepdims=True)     # one XLU reduce / step
        amin = kmin & idx_mask                          # (TM, 1) argmin index
        sel = lane_n == amin                            # one-hot rows (TM, N)
        # gather the chosen neighbour's features on the MXU:
        #   step[c, m] = sum_n f[c, n] * sel[m, n]
        step = lax.dot_general(fg, sel.astype(fg.dtype),
                               (((1,), (1,)), ((), ())),
                               preferred_element_type=jnp.float32)  # (Co, TM)
        acc = jnp.maximum(acc, step)
        keys = jnp.where(sel, excluded, keys)           # drop chosen neighbour
        return keys, acc

    acc0 = jnp.full((co, TM), -jnp.inf, dtype=jnp.float32)
    _, acc = lax.fori_loop(0, k, body, (keys0, acc0), unroll=2)
    y_ref[0, :, :] = acc.astype(y_ref.dtype)


# ---------------------------------------------------------------------------
# Wrapper (glue: BN folding, tile selection, pallas_call plumbing).
# ---------------------------------------------------------------------------
def transition_down(x, coords, conv_weight, bn_gamma, bn_beta, bn_mean, bn_var,
                    *, k, num_samples, bn_eps=1e-5, tile_m=128, mxu_bf16=True,
                    vmem_limit_bytes=None):
    B, c_in, N = x.shape
    _, D, _ = coords.shape
    M = num_samples
    c_out = conv_weight.shape[0]
    assert D == 3 and M <= N and 1 <= k <= N

    # ---- Kernel 1: FPS -> fps_coords (B, 3, M) and fps indices (B, M, 1) ----
    fps_coords, fps_idx = pl.pallas_call(
        _fps_kernel,
        out_shape=(jax.ShapeDtypeStruct((B, D, M), coords.dtype),
                   jax.ShapeDtypeStruct((B, M, 1), jnp.int32)),
        grid=(B,),
        in_specs=[pl.BlockSpec((1, D, N), lambda b: (b, 0, 0))],
        out_specs=(pl.BlockSpec((1, D, M), lambda b: (b, 0, 0)),
                   pl.BlockSpec((1, M, 1), lambda b: (b, 0, 0))),
        compiler_params=pltpu.CompilerParams(
            dimension_semantics=("parallel",)),
    )(coords)

    # ---- glue: fold eval-mode BatchNorm into per-channel scale/shift ----
    inv_std = 1.0 / jnp.sqrt(bn_var + bn_eps)
    scale = (bn_gamma * inv_std).reshape(c_out, 1).astype(jnp.float32)
    shift = (bn_beta - bn_mean * bn_gamma * inv_std).reshape(c_out, 1)
    shift = shift.astype(jnp.float32)
    w2d = conv_weight.reshape(c_out, c_in).astype(jnp.float32)

    # ---- choose a lane-dense tile over the sampled-point axis ----
    # TM multiple of 128 keeps output stores unmasked; tune tile_m per chip
    # (v7x has half the VMEM of v5e/v6e) together with vmem_limit_bytes.
    if M % 128 == 0:
        TM = 128
        if tile_m is not None and tile_m % 128 == 0 and M % tile_m == 0:
            TM = tile_m
    else:
        TM = M                      # small / ragged M: single full block
    n_mt = M // TM

    cp_kwargs = dict(dimension_semantics=("parallel", "parallel"))
    if vmem_limit_bytes is not None:
        cp_kwargs["vmem_limit_bytes"] = vmem_limit_bytes

    # ---- Kernel 2: fused kNN + pointwise MLP + max over k: y (B,C_out,M) ----
    y = pl.pallas_call(
        functools.partial(_knn_mlp_max_kernel, k=k, mxu_bf16=mxu_bf16),
        out_shape=jax.ShapeDtypeStruct((B, c_out, M), x.dtype),
        grid=(B, n_mt),
        in_specs=[
            pl.BlockSpec((c_out, c_in), lambda b, m: (0, 0)),    # conv weight
            pl.BlockSpec((c_out, 1), lambda b, m: (0, 0)),       # BN scale
            pl.BlockSpec((c_out, 1), lambda b, m: (0, 0)),       # BN shift
            pl.BlockSpec((1, c_in, N), lambda b, m: (b, 0, 0)),  # features
            pl.BlockSpec((1, D, N), lambda b, m: (b, 0, 0)),     # coords
            pl.BlockSpec((1, TM, 1), lambda b, m: (b, m, 0)),    # fps indices
        ],
        out_specs=pl.BlockSpec((1, c_out, TM), lambda b, m: (b, 0, m)),
        compiler_params=pltpu.CompilerParams(**cp_kwargs),
    )(w2d, scale, shift, x, coords, fps_idx)

    return y, fps_coords


if __name__ == "__main__":
    B, C_IN, C_OUT, N, K, M = 2, 16, 32, 512, 8, 256

    key = jax.random.PRNGKey(0)
    k_x, k_c, k_w = jax.random.split(key, 3)
    x = jax.random.normal(k_x, (B, C_IN, N), dtype=jnp.float32)
    coords = jax.random.normal(k_c, (B, 3, N), dtype=jnp.float32)

    # Deterministic parameters (shapes per the module __init__):
    #   Conv2d(C_IN, C_OUT, kernel_size=1, bias=False): weight (C_OUT, C_IN, 1, 1)
    #   BatchNorm2d(C_OUT) fresh init: gamma=1, beta=0, mean=0, var=1 (eval mode)
    conv_weight = (jax.random.normal(k_w, (C_OUT, C_IN, 1, 1), dtype=jnp.float32)
                   / jnp.sqrt(jnp.float32(C_IN)))
    bn_gamma = jnp.ones((C_OUT,), jnp.float32)
    bn_beta = jnp.zeros((C_OUT,), jnp.float32)
    bn_mean = jnp.zeros((C_OUT,), jnp.float32)
    bn_var = jnp.ones((C_OUT,), jnp.float32)

    y, fps_coords = transition_down(x, coords, conv_weight, bn_gamma, bn_beta,
                                    bn_mean, bn_var, k=K, num_samples=M,
                                    tile_m=128)
    jax.block_until_ready((y, fps_coords))
    assert y.shape == (B, C_OUT, M)
    assert fps_coords.shape == (B, 3, M)
    assert bool(jnp.isfinite(y).all()) and bool(jnp.isfinite(fps_coords).all())
    print("KERNEL_OK")
</pallas_src>

<mosaic_0001>
module attributes {stable_mosaic.version = 11 : i64} {
  func.func @_fps_kernel(%arg0: i32, %arg1: memref<1x3x512xf32, #tpu.memory_space<vmem>>, %arg2: memref<1x3x256xf32, #tpu.memory_space<vmem>>, %arg3: memref<1x256x1xi32, #tpu.memory_space<vmem>>) attributes {dimension_semantics = [#tpu.dimension_semantics<parallel>], iteration_bounds = array<i64: 2>, scalar_prefetch = 0 : i64, scratch_operands = 0 : i64, tpu.core_type = #tpu.core_type<tc>, window_params = [{transform_indices = @transform_0, window_bounds = array<i64: 1, 3, 512>}, {transform_indices = @transform_1, window_bounds = array<i64: 1, 3, 256>}, {transform_indices = @transform_2, window_bounds = array<i64: 1, 256, 1>}]} {
    %c0 = arith.constant 0 : index
    %c0_0 = arith.constant 0 : index
    %c0_1 = arith.constant 0 : index
    %0 = vector.load %arg1[%c0, %c0_0, %c0_1] : memref<1x3x512xf32, #tpu.memory_space<vmem>>, vector<1x3x512xf32>
    %1 = vector.shape_cast %0 : vector<1x3x512xf32> to vector<3x512xf32>
    %2 = tpu.iota {dimensions = array<i32: 1>} : vector<1x512xi32>
    %3 = tpu.iota {dimensions = array<i32: 1>} : vector<1x256xi32>
    %4 = tpu.iota {dimensions = array<i32: 0>} : vector<256x1xi32>
    %c0_i32 = arith.constant 0 : i32
    %5 = vector.broadcast %c0_i32 : i32 to vector<1x512xi32>
    %6 = arith.cmpi eq, %2, %5 : vector<1x512xi32>
    %7 = arith.extui %6 : vector<1x512xi1> to vector<1x512xi32>
    %8 = arith.sitofp %7 : vector<1x512xi32> to vector<1x512xf32>
    %9 = vector.broadcast %8 : vector<1x512xf32> to vector<3x512xf32>
    %10 = arith.mulf %1, %9 : vector<3x512xf32>
    %cst = arith.constant dense<0.000000e+00> : vector<3xf32>
    %11 = vector.multi_reduction <add>, %10, %cst [1] : vector<3x512xf32> to vector<3xf32>
    %12 = vector.shape_cast %11 : vector<3xf32> to vector<3x1xf32>
    %c0_i32_2 = arith.constant 0 : i32
    %13 = vector.broadcast %c0_i32_2 : i32 to vector<1x256xi32>
    %14 = arith.cmpi eq, %3, %13 : vector<1x256xi32>
    %cst_3 = arith.constant 0.000000e+00 : f32
    %15 = vector.broadcast %cst_3 : f32 to vector<3x256xf32>
    %16 = vector.shape_cast %14 : vector<1x256xi1> to vector<1x256xi1>
    %17 = vector.broadcast %16 : vector<1x256xi1> to vector<3x256xi1>
    %18 = vector.shape_cast %12 : vector<3x1xf32> to vector<3x1xf32>
    %19 = vector.broadcast %18 : vector<3x1xf32> to vector<3x256xf32>
    %20 = arith.select %17, %19, %15 : vector<3x256xi1>, vector<3x256xf32>
    %c0_i32_4 = arith.constant 0 : i32
    %21 = vector.broadcast %c0_i32_4 : i32 to vector<256x1xi32>
    %cst_5 = arith.constant 1.000000e+10 : f32
    %22 = vector.broadcast %cst_5 : f32 to vector<1x512xf32>
    %c1_i32 = arith.constant 1 : i32
    %c255_i32 = arith.constant 255 : i32
    %23 = arith.addi %c1_i32, %c255_i32 : i32
    %c1_i32_6 = arith.constant 1 : i32
    %24:4 = scf.for %arg4 = %c1_i32 to %23 step %c1_i32_6 iter_args(%arg5 = %22, %arg6 = %12, %arg7 = %20, %arg8 = %21) -> (vector<1x512xf32>, vector<3x1xf32>, vector<3x256xf32>, vector<256x1xi32>)  : i32 {
      %31 = vector.broadcast %arg6 : vector<3x1xf32> to vector<3x512xf32>
      %32 = arith.subf %1, %31 : vector<3x512xf32>
      %33 = arith.mulf %32, %32 : vector<3x512xf32>
      %cst_14 = arith.constant dense<0.000000e+00> : vector<512xf32>
      %34 = vector.multi_reduction <add>, %33, %cst_14 [0] : vector<3x512xf32> to vector<512xf32>
      %35 = vector.shape_cast %34 : vector<512xf32> to vector<1x512xf32>
      %36 = arith.minimumf %arg5, %35 : vector<1x512xf32>
      %37 = vector.shape_cast %36 : vector<1x512xf32> to vector<1x1x512xf32>
      %cst_15 = arith.constant dense<0xFF800000> : vector<1xf32>
      %38 = vector.multi_reduction <maximumf>, %37, %cst_15 [1, 2] : vector<1x1x512xf32> to vector<1xf32>
      %39 = vector.shape_cast %38 : vector<1xf32> to vector<1x1x1xf32>
      %40 = vector.extract %39[0, 0, 0] : f32 from vector<1x1x1xf32>
      %41 = vector.broadcast %40 : f32 to vector<1x512xf32>
      %42 = arith.cmpf oge, %36, %41 : vector<1x512xf32>
      %c512_i32 = arith.constant 512 : i32
      %43 = vector.broadcast %c512_i32 : i32 to vector<1x512xi32>
      %44 = arith.select %42, %2, %43 : vector<1x512xi1>, vector<1x512xi32>
      %45 = vector.shape_cast %44 : vector<1x512xi32> to vector<1x1x512xi32>
      %cst_16 = arith.constant dense<2147483647> : vector<1xi32>
      %46 = vector.multi_reduction <minsi>, %45, %cst_16 [1, 2] : vector<1x1x512xi32> to vector<1xi32>
      %47 = vector.shape_cast %46 : vector<1xi32> to vector<1x1x1xi32>
      %48 = vector.extract %47[0, 0, 0] : i32 from vector<1x1x1xi32>
      %49 = vector.broadcast %48 : i32 to vector<1x512xi32>
      %50 = arith.cmpi eq, %2, %49 : vector<1x512xi32>
      %51 = arith.extui %50 : vector<1x512xi1> to vector<1x512xi32>
      %52 = arith.sitofp %51 : vector<1x512xi32> to vector<1x512xf32>
      %53 = vector.broadcast %52 : vector<1x512xf32> to vector<3x512xf32>
      %54 = arith.mulf %1, %53 : vector<3x512xf32>
      %cst_17 = arith.constant dense<0.000000e+00> : vector<3xf32>
      %55 = vector.multi_reduction <add>, %54, %cst_17 [1] : vector<3x512xf32> to vector<3xf32>
      %56 = vector.shape_cast %55 : vector<3xf32> to vector<3x1xf32>
      %57 = vector.broadcast %arg4 : i32 to vector<1x256xi32>
      %58 = arith.cmpi eq, %3, %57 : vector<1x256xi32>
      %59 = vector.shape_cast %58 : vector<1x256xi1> to vector<1x256xi1>
      %60 = vector.broadcast %59 : vector<1x256xi1> to vector<3x256xi1>
      %61 = vector.shape_cast %56 : vector<3x1xf32> to vector<3x1xf32>
      %62 = vector.broadcast %61 : vector<3x1xf32> to vector<3x256xf32>
      %63 = arith.select %60, %62, %arg7 : vector<3x256xi1>, vector<3x256xf32>
      %64 = vector.broadcast %arg4 : i32 to vector<256x1xi32>
      %65 = arith.cmpi eq, %4, %64 : vector<256x1xi32>
      %66 = vector.broadcast %48 : i32 to vector<256x1xi32>
      %67 = arith.select %65, %66, %arg8 : vector<256x1xi1>, vector<256x1xi32>
      scf.yield %36, %56, %63, %67 : vector<1x512xf32>, vector<3x1xf32>, vector<3x256xf32>, vector<256x1xi32>
    }
    %c255_i32_7 = arith.constant 255 : i32
    %c0_8 = arith.constant 0 : index
    %c0_9 = arith.constant 0 : index
    %c0_10 = arith.constant 0 : index
    %25 = vector.load %arg2[%c0_8, %c0_9, %c0_10] : memref<1x3x256xf32, #tpu.memory_space<vmem>>, vector<1x3x256xf32>
    %26 = vector.shape_cast %25 : vector<1x3x256xf32> to vector<3x256xf32>
    %27 = vector.shape_cast %24#2 : vector<3x256xf32> to vector<1x3x256xf32>
    tpu.vector_store %arg2[%c0_8, %c0_9, %c0_10], %27 {strides = array<i32>} : memref<1x3x256xf32, #tpu.memory_space<vmem>>, vector<1x3x256xf32>,
    %c0_11 = arith.constant 0 : index
    %c0_12 = arith.constant 0 : index
    %c0_13 = arith.constant 0 : index
    %28 = vector.load %arg3[%c0_11, %c0_12, %c0_13] : memref<1x256x1xi32, #tpu.memory_space<vmem>>, vector<1x256x1xi32>
    %29 = vector.shape_cast %28 : vector<1x256x1xi32> to vector<256x1xi32>
    %30 = vector.shape_cast %24#3 : vector<256x1xi32> to vector<1x256x1xi32>
    tpu.vector_store %arg3[%c0_11, %c0_12, %c0_13], %30 {strides = array<i32>} : memref<1x256x1xi32, #tpu.memory_space<vmem>>, vector<1x256x1xi32>,
    return
  }
  func.func @transform_0(%arg0: i32) -> (i32, i32, i32) {
    %c0_i32 = arith.constant 0 : i32
    %c0_i32_0 = arith.constant 0 : i32
    %c0_i32_1 = arith.constant 0 : i32
    return %arg0, %c0_i32, %c0_i32_0 : i32, i32, i32
  }
  func.func @transform_1(%arg0: i32) -> (i32, i32, i32) {
    %c0_i32 = arith.constant 0 : i32
    %c0_i32_0 = arith.constant 0 : i32
    %c0_i32_1 = arith.constant 0 : i32
    return %arg0, %c0_i32, %c0_i32_0 : i32, i32, i32
  }
  func.func @transform_2(%arg0: i32) -> (i32, i32, i32) {
    %c0_i32 = arith.constant 0 : i32
    %c0_i32_0 = arith.constant 0 : i32
    %c0_i32_1 = arith.constant 0 : i32
    return %arg0, %c0_i32, %c0_i32_0 : i32, i32, i32
  }
}

</mosaic_0001>

<bundles_post_ra>
// kernel: tpu_custom_call.1
= control target key start
LH: loop header
LB: loop body
LE: loop exit
PB: predicated region body
PF: predicated region fallthrough
CT: control target
= control target key end

     0   :  { %s1432_s9 = smov 0   ;;  %s2344_s0 = inlined_call_operand.vmem [shape: f32[2,3,512], index: 0, kind: input, shape index: {}]   ;;  %s2345_s1 = inlined_call_operand.vmem [shape: f32[2,3,256], index: 1, kind: output, shape index: {0}]   ;;  %s2346_s2 = inlined_call_operand.vmem [shape: s32[2,256,1], index: 2, kind: output, shape index: {1}]  }
   0x1 LB: > { %s730_s10 = sadd.s32 4294967295, %s1252_s9   ;;  %p734_p0 = scmp.ge.s32.totalorder %s1252_s9, 1  ;;  %s1252_s9 = sphi %s1432_s9, %s13_s9  }
   0x2   : > { %p115_p1 = scmp.lt.s32.totalorder %s1252_s9, 3 }
   0x4   : > { %p116_p2 = pnand %p734_p0, %p115_p1 }
   0x6   : > { %119 = sbr.rel (%p116_p2) target bundleno = 944 (0x3b0), region = 24 }
   0xd   : > { %p142_p3 = scmp.lt.s32.totalorder %s730_s10, 1  ;;  %v159_v0 = vlaneseq  ;;  %v1414_v12 = vmov 0.0   ;;  %vm2360_vm1 = vcmask 1042432   ;;  %v1579_v56 = vmov 0   ;;  %s1657_s23 = smov 1  }
   0xe   : > { %v214_v13 = vcombine.low %v1414_v12, %v1414_v12  ;;  %v1581_v57 = vmov 0   ;;  %v1583_v58 = vmov 0   ;;  %v1585_v59 = vmov 0  }
   0xf   : > { %s2646_s10 = smov (!%p142_p3, %s730_s10), 1  ;;  %v1442_v1 = vand.u32 127, %v159_v0  ;;  %v1444_v2 = vshrl.u32 %v159_v0, 7  ;;  %v1587_v60 = vmov 0   ;;  %v1589_v61 = vmov 0  }
  0x10   : > { %s749_s11 = sshll.u32 %s2646_s10, 3  ;;  %s750_s15 = sshll.u32 %s2646_s10, 8  ;;  %v1591_v62 = vmov 0   ;;  %v1593_v63 = vmov 0   ;;  %v1595_v0 = vmov 0  }
  0x11   : > { %2392 = vst [vmem:[#allocation2_spill] sm:$0xff] %v1442_v1  ;;  %2393 = vst [vmem:[#allocation3_spill] sm:$0xff] %v1444_v2  ;;  %v1448_v3 = vadd.s32 128, %v1442_v1  ;;  %v1451_v4 = vadd.s32 256, %v1442_v1  ;;  %v1454_v5 = vadd.s32 384, %v1442_v1  ;;  %v1457_v6 = vadd.s32 8, %v1444_v2  ;;  %s1462_s14 = scalar_lea.vmem %s2345_s1, %s749_s11  ;;  %s1483_s18 = scalar_lea.vmem %s2346_s2, %s750_s15 }
  0x12   : > { %v1465_v7 = vadd.s32 16, %v1444_v2  ;;  %v1468_v8 = vadd.s32 24, %v1444_v2  ;;  %v1471_v9 = vadd.s32 32, %v1444_v2  ;;  %v1474_v10 = vadd.s32 40, %v1444_v2  ;;  %s748_s19 = sshll.u32 %s2646_s10, 4 }
  0x13   : > { %2394 = vst [vmem:[#allocation4_spill] sm:$0xff] %v1448_v3  ;;  %2395 = vst [vmem:[#allocation5_spill] sm:$0xff] %v1451_v4  ;;  %v1478_v11 = vadd.s32 48, %v1444_v2  ;;  %v1486_v14 = vadd.s32 56, %v1444_v2  ;;  %v1489_v15 = vadd.s32 64, %v1444_v2  ;;  %v1492_v16 = vadd.s32 72, %v1444_v2  ;;  %s146_s22 = scalar_lea.vmem %s2344_s0, %s748_s19 }
  0x14   : > { %2396 = vst [vmem:[#allocation6_spill] sm:$0xff] %v1454_v5  ;;  %2397 = vst [vmem:[#allocation7_spill] sm:$0xff] %v1457_v6  ;;  %v1495_v17 = vadd.s32 80, %v1444_v2  ;;  %v1499_v18 = vadd.s32 88, %v1444_v2  ;;  %v1502_v19 = vadd.s32 96, %v1444_v2  ;;  %v1505_v20 = vadd.s32 104, %v1444_v2 }
  0x15   : > { %2398 = vst [vmem:[#allocation8_spill] sm:$0xff] %v1465_v7  ;;  %2399 = vst [vmem:[#allocation9_spill] sm:$0xff] %v1468_v8  ;;  %v1508_v21 = vadd.s32 112, %v1444_v2  ;;  %v1511_v22 = vadd.s32 120, %v1444_v2  ;;  %v1514_v23 = vadd.s32 128, %v1444_v2  ;;  %v1517_v24 = vadd.s32 136, %v1444_v2 }
  0x16   : > { %2400 = vst [vmem:[#allocation10_spill] sm:$0xff] %v1471_v9  ;;  %2401 = vst [vmem:[#allocation11_spill] sm:$0xff] %v1474_v10  ;;  %v1520_v25 = vadd.s32 144, %v1444_v2  ;;  %v1523_v26 = vadd.s32 152, %v1444_v2  ;;  %v1526_v27 = vadd.s32 160, %v1444_v2  ;;  %v1529_v28 = vadd.s32 168, %v1444_v2 }
  0x17   : > { %2402 = vst [vmem:[#allocation12_spill] sm:$0xff] %v1478_v11  ;;  %2403 = vst [vmem:[#allocation13_spill] sm:$0xff] %v1486_v14  ;;  %v1532_v29 = vadd.s32 176, %v1444_v2  ;;  %v1538_v30 = vadd.s32 184, %v1444_v2  ;;  %v1541_v31 = vadd.s32 192, %v1444_v2  ;;  %v1544_v32 = vadd.s32 200, %v1444_v2 }
  0x18   : > { %2404 = vst [vmem:[#allocation14_spill] sm:$0xff] %v1489_v15  ;;  %2405 = vst [vmem:[#allocation15_spill] sm:$0xff] %v1492_v16  ;;  %v1547_v33 = vadd.s32 208, %v1444_v2  ;;  %v1549_v34 = vld [vmem:[%s146_s22 + $0x8] sm:$0x77]  ;;  %v1552_v35 = vadd.s32 216, %v1444_v2 }
  0x19   : > { %2406 = vst [vmem:[#allocation16_spill] sm:$0xff] %v1495_v17  ;;  %2407 = vst [vmem:[#allocation17_spill] sm:$0xff] %v1499_v18  ;;  %v1555_v36 = vadd.s32 224, %v1444_v2  ;;  %v1558_v37 = vadd.s32 232, %v1444_v2  ;;  %v1561_v38 = vadd.s32 240, %v1444_v2  ;;  %v1564_v39 = vadd.s32 248, %v1444_v2 }
  0x1a   : > { %2408 = vst [vmem:[#allocation18_spill] sm:$0xff] %v1502_v19  ;;  %2409 = vst [vmem:[#allocation19_spill] sm:$0xff] %v1505_v20  ;;  %vm197_vm0 = vcmp.eq.s32.totalorder %v1442_v1, 0  ;;  %v1567_v40 = vld [vmem:[%s146_s22] sm:$0x77]  ;;  %v218_v43 = vmul.f32 %v214_v13, %v1549_v34  ;;  %v1599_v13 = vmov 0  }
  0x1b   : > { %2410 = vst [vmem:[#allocation20_spill] sm:$0xff] %v1508_v21  ;;  %2411 = vst [vmem:[#allocation21_spill] sm:$0xff] %v1511_v22  ;;  %v741_v41 = vsel %vm197_vm0, 1.0, %v1414_v12 }
  0x1c   : > { %2412 = vst [vmem:[#allocation22_spill] sm:$0xff] %v1514_v23  ;;  %2413 = vst [vmem:[#allocation23_spill] sm:$0xff] %v1517_v24  ;;  %v213_v42 = vcombine.low %v741_v41, %v1414_v12  ;;  %v222_v46 = vcombine.high %v218_v43, %v218_v43  ;;  %v229_v49 = vsel %vm2360_vm1, %v218_v43, 0.0  ;;  %v1597_v12 = vmov 0  }
  0x1d   : > { %2414 = vst [vmem:[#allocation24_spill] sm:$0xff] %v1520_v25  ;;  %2415 = vst [vmem:[#allocation25_spill] sm:$0xff] %v1523_v26  ;;  %v1601_v41 = vmov 0   ;;  %v1605_v43 = vmov 0   ;;  %v1655_v26 = vmov 1e+10  }
  0x1e   : > { %2416 = vst [vmem:[#allocation26_spill] sm:$0xff] %v1526_v27  ;;  %2417 = vst [vmem:[#allocation27_spill] sm:$0xff] %v1529_v28  ;;  %v217_v44 = vmul.f32 %v213_v42, %v1567_v40  ;;  %v231_v51 = vsel %vm2360_vm1, %v222_v46, 0.0  ;;  %v1603_v42 = vmov 0   ;;  %v1611_v46 = vmov 0  }
  0x1f   : > { %2418 = vst [vmem:[#allocation28_spill] sm:$0xff] %v1532_v29  ;;  %2419 = vst [vmem:[#allocation29_spill] sm:$0xff] %v1538_v30  ;;  %v1643_v30 = vmov 0.0   ;;  %v1649_v29 = vmov 1e+10  }
  0x20   : > { %2420 = vst [vmem:[#allocation30_spill] sm:$0xff] %v1541_v31  ;;  %2421 = vst [vmem:[#allocation31_spill] sm:$0xff] %v1544_v32  ;;  %v221_v45 = vcombine.high %v217_v44, %v217_v44  ;;  %v226_v47 = vsel %vm2360_vm1, %v217_v44, 0.0  ;;  %v1607_v44 = vmov 0   ;;  %v1639_v32 = vmov 0  }
  0x21   : > { %2422 = vst [vmem:[#allocation32_spill] sm:$0xff] %v1547_v33  ;;  %2423 = vst [vmem:[#allocation33_spill] sm:$0xff] %v1549_v34  ;;  %v1637_v33 = vmov 0   ;;  %v1641_v31 = vmov 0   ;;  %v1651_v28 = vmov 1e+10  }
  0x22   : > { %2424 = vst [vmem:[#allocation34_spill] sm:$0xff] %v1552_v35  ;;  %2425 = vst [vmem:[#allocation35_spill] sm:$0xff] %v1555_v36  ;;  %v227_v48 = vsel %vm2360_vm1, %v221_v45, 0.0  ;;  %v1609_v45 = vmov 0   ;;  %v1633_v36 = vmov 0   ;;  %v1635_v35 = vmov 0  }
  0x23   : > { %2426 = vst [vmem:[#allocation36_spill] sm:$0xff] %v1558_v37  ;;  %2427 = vst [vmem:[#allocation37_spill] sm:$0xff] %v1561_v38  ;;  %v228_v50 = vadd.f32 %v227_v48, %v226_v47  ;;  %v1613_v47 = vmov 0   ;;  %v1615_v48 = vmov 0   ;;  %v1629_v38 = vmov 0  }
  0x24   : > { %2428 = vst [vmem:[#allocation38_spill] sm:$0xff] %v1564_v39  ;;  %2429 = vst [vmem:[#allocation39_spill] sm:$0xff] %v1567_v40  ;;  %v1627_v39 = vmov 0   ;;  %v1631_v37 = vmov 0   ;;  %v1653_v27 = vmov 1e+10  }
  0x25   : > { %v230_v52 = vadd.f32 %v229_v49, %v228_v50  ;;  %v1617_v49 = vmov 0   ;;  %v1619_v50 = vmov 0  }
  0x27   : > { %v232_v53 = vadd.f32 %v231_v51, %v230_v52  ;;  %v1621_v51 = vmov 0   ;;  %v1623_v52 = vmov 0  }
  0x29   : > { %233 = vadd.xlane.f32.xlu0 %v232_v53  ;;  %v1625_v53 = vmov 0  }
  0xb6   : > { %v234_v54 = vpop.xlane.xlu0 %233  }
  0xb7   : > { %v237_v55 = vsel %vm197_vm0, %v234_v54, 0.0  }
  0xb8 LB: >> { %v2430_v25 = vld [vmem:[#allocation24_spill] sm:$0xff]  ;;  %v2431_v40 = vld [vmem:[#allocation39_spill] sm:$0xff]  ;;  %v2432_v34 = vld [vmem:[#allocation33_spill] sm:$0xff]  ;;  %2449 = vst [vmem:[#allocation40_spill] sm:$0xff] %v1256_v56  ;;  %v1415_v56 = vmov 839922192   ;;  %v1328_v48 = vphi %v1615_v48, %v2618_v48   ;;  %v1324_v47 = vphi %v1613_v47, %v2617_v47   ;;  %v1320_v46 = vphi %v1611_v46, %v2616_v46   ;;  %v1316_v45 = vphi %v1609_v45, %v2615_v45   ;;  %v1312_v44 = vphi %v1607_v44, %v2614_v44   ;;  %v1308_v43 = vphi %v1605_v43, %v2613_v43   ;;  %v1304_v42 = vphi %v1603_v42, %v2612_v42   ;;  %v1300_v41 = vphi %v1601_v41, %v2611_v41   ;;  %v1296_v13 = vphi %v1599_v13, %v2610_v13   ;;  %v1292_v12 = vphi %v1597_v12, %v2609_v12   ;;  %v1288_v0 = vphi %v1595_v0, %v2608_v0   ;;  %v1284_v63 = vphi %v1593_v63, %v2607_v63   ;;  %v1280_v62 = vphi %v1591_v62, %v2606_v62   ;;  %v1276_v61 = vphi %v1589_v61, %v2605_v61   ;;  %v1272_v60 = vphi %v1587_v60, %v2604_v60   ;;  %v1268_v59 = vphi %v1585_v59, %v2603_v59   ;;  %v1264_v58 = vphi %v1583_v58, %v2602_v58   ;;  %v1260_v57 = vphi %v1581_v57, %v2601_v57   ;;  %v1256_v56 = vphi %v1579_v56, %v2600_v56   ;;  %s1412_s23 = sphi %s1657_s23, %s2634_s23   ;;  %v1408_v26 = vphi %v1655_v26, %v1776_v26   ;;  %v1404_v27 = vphi %v1653_v27, %v1780_v27   ;;  %v1400_v28 = vphi %v1651_v28, %v1778_v28   ;;  %v1396_v29 = vphi %v1649_v29, %v1782_v29   ;;  %v1392_v54 = vphi %v234_v54, %v408_v54   ;;  %v1388_v55 = vphi %v237_v55, %v2633_v55   ;;  %v1384_v30 = vphi %v1643_v30, %v2632_v30   ;;  %v1380_v31 = vphi %v1641_v31, %v2631_v31   ;;  %v1376_v32 = vphi %v1639_v32, %v2630_v32   ;;  %v1372_v33 = vphi %v1637_v33, %v2629_v33   ;;  %v1368_v35 = vphi %v1635_v35, %v2628_v35   ;;  %v1364_v36 = vphi %v1633_v36, %v2627_v36   ;;  %v1360_v37 = vphi %v1631_v37, %v2626_v37   ;;  %v1356_v38 = vphi %v1629_v38, %v2625_v38   ;;  %v1352_v39 = vphi %v1627_v39, %v2624_v39   ;;  %v1348_v53 = vphi %v1625_v53, %v2623_v53   ;;  %v1344_v52 = vphi %v1623_v52, %v2622_v52   ;;  %v1340_v51 = vphi %v1621_v51, %v2621_v51   ;;  %v1336_v50 = vphi %v1619_v50, %v2620_v50   ;;  %v1332_v49 = vphi %v1617_v49, %v2619_v49  }
  0xb9   : >> { %v2433_v18 = vld [vmem:[#allocation17_spill] sm:$0xff]  ;;  %v2434_v17 = vld [vmem:[#allocation16_spill] sm:$0xff]  ;;  %v2435_v16 = vld [vmem:[#allocation15_spill] sm:$0xff]  ;;  %2450 = vst [vmem:[#allocation41_spill] sm:$0xff] %v1260_v57  ;;  %v286_v57 = vunpack.c.l.s4 %v1415_v56  ;;  %vm2474_vm1 = vcmask 1042432   ;;  %s244_s26 = sadd.s32 1, %s1412_s23  }
  0xba   : >> { %v2436_v15 = vld [vmem:[#allocation14_spill] sm:$0xff]  ;;  %v2437_v14 = vld [vmem:[#allocation13_spill] sm:$0xff]  ;;  %v2438_v11 = vld [vmem:[#allocation12_spill] sm:$0xff]  ;;  %2451 = vst [vmem:[#allocation42_spill] sm:$0xff] %v1264_v58  ;;  %p2116_p4 = scmp.ge.s32.totalorder %s244_s26, 256  }
  0xbb   : >> { %v2439_v10 = vld [vmem:[#allocation11_spill] sm:$0xff]  ;;  %v2440_v9 = vld [vmem:[#allocation10_spill] sm:$0xff]  ;;  %v2441_v8 = vld [vmem:[#allocation9_spill] sm:$0xff]  ;;  %2452 = vst [vmem:[#allocation43_spill] sm:$0xff] %v1268_v59  ;;  %v287_v58 = vunpack.c.0.s8 %v286_v57 }
  0xbc   : >> { %v2442_v7 = vld [vmem:[#allocation8_spill] sm:$0xff]  ;;  %v2443_v6 = vld [vmem:[#allocation7_spill] sm:$0xff]  ;;  %v2445_v1 = vld [vmem:[#allocation2_spill] sm:$0xff]  ;;  %2453 = vst [vmem:[#allocation44_spill] sm:$0xff] %v1272_v60 }
  0xbd   : >> { %v2444_v2 = vld [vmem:[#allocation3_spill] sm:$0xff]  ;;  %v2446_v5 = vld [vmem:[#allocation6_spill] sm:$0xff]  ;;  %v2447_v4 = vld [vmem:[#allocation5_spill] sm:$0xff]  ;;  %2454 = vst [vmem:[#allocation45_spill] sm:$0xff] %v1276_v61 }
  0xbe   : >> { %v2448_v3 = vld [vmem:[#allocation4_spill] sm:$0xff]  ;;  %2455 = vst [vmem:[#allocation46_spill] sm:$0xff] %v1280_v62  ;;  %2456 = vst [vmem:[#allocation47_spill] sm:$0xff] %v1284_v63 }
  0xbf   : >> { %2457 = vst [vmem:[#allocation48_spill] sm:$0xff] %v1288_v0  ;;  %2458 = vst [vmem:[#allocation49_spill] sm:$0xff] %v1292_v12  ;;  %v2477_v21 = vld [vmem:[#allocation20_spill] sm:$0xff] }
  0xc0   : >> { %2459 = vst [vmem:[#allocation50_spill] sm:$0xff] %v1296_v13  ;;  %2460 = vst [vmem:[#allocation51_spill] sm:$0xff] %v1300_v41 }
  0xc1   : >> { %2461 = vst [vmem:[#allocation52_spill] sm:$0xff] %v1304_v42  ;;  %2462 = vst [vmem:[#allocation53_spill] sm:$0xff] %v1308_v43 }
  0xc2   : >> { %2463 = vst [vmem:[#allocation54_spill] sm:$0xff] %v1312_v44  ;;  %2464 = vst [vmem:[#allocation55_spill] sm:$0xff] %v1316_v45 }
  0xc3   : >> { %2465 = vst [vmem:[#allocation56_spill] sm:$0xff] %v1320_v46  ;;  %2466 = vst [vmem:[#allocation57_spill] sm:$0xff] %v1324_v47 }
  0xc4   : >> { %2467 = vst [vmem:[#allocation58_spill] sm:$0xff] %v1328_v48  ;;  %2468 = vst [vmem:[#allocation59_spill] sm:$0xff] %v1332_v49 }
  0xc5   : >> { %2469 = vst [vmem:[#allocation60_spill] sm:$0xff] %v1336_v50  ;;  %2470 = vst [vmem:[#allocation61_spill] sm:$0xff] %v1340_v51 }
  0xc6   : >> { %2471 = vst [vmem:[#allocation62_spill] sm:$0xff] %v1344_v52  ;;  %2472 = vst [vmem:[#allocation63_spill] sm:$0xff] %v1384_v30  ;;  %v290_v30 = vsub.s32 %v287_v58, %v2444_v2 }
  0xc7   : >> { %2473 = vst [vmem:[#allocation64_spill] sm:$0xff] %v1388_v55 }
  0xc8   : >> { %v291_v59 = vrot.slane %v1392_v54, %v290_v30 }
  0xca   : >> { %v293_v55 = vsub.f32 %v2431_v40, %v291_v59  ;;  %v294_v60 = vsub.f32 %v2432_v34, %v291_v59 }
  0xcc   : >> { %v295_v61 = vmul.f32 %v293_v55, %v293_v55  ;;  %v296_v62 = vmul.f32 %v294_v60, %v294_v60 }
  0xce   : >> { %v299_v63 = vcombine.high %v295_v61, %v295_v61  ;;  %v300_v0 = vcombine.high %v296_v62, %v296_v62  ;;  %v303_v12 = vsel %vm2474_vm1, %v295_v61, 0.0  ;;  %v317_v13 = vsel %vm2474_vm1, %v296_v62, 0.0 }
  0xcf   : >> { %v304_v41 = vrot.slane %v303_v12, 4  ;;  %v318_v42 = vrot.slane %v317_v13, 4 }
  0xd0   : >> { %v310_v56 = vsel %vm2474_vm1, %v299_v63, 0.0  ;;  %v324_v57 = vsel %vm2474_vm1, %v300_v0, 0.0 }
  0xd1   : >> { %v305_v58 = vadd.f32 %v304_v41, %v303_v12  ;;  %v311_v30 = vrot.slane %v310_v56, 4  ;;  %v319_v54 = vadd.f32 %v318_v42, %v317_v13  ;;  %v325_v43 = vrot.slane %v324_v57, 4 }
  0xd3   : >> { %v306_v44 = vrot.slane %v305_v58, 2  ;;  %v312_v59 = vadd.f32 %v311_v30, %v310_v56  ;;  %v320_v55 = vrot.slane %v319_v54, 2  ;;  %v326_v60 = vadd.f32 %v325_v43, %v324_v57 }
  0xd5   : >> { %v307_v45 = vadd.f32 %v306_v44, %v305_v58  ;;  %v313_v46 = vrot.slane %v312_v59, 2  ;;  %v321_v47 = vadd.f32 %v320_v55, %v319_v54  ;;  %v327_v61 = vrot.slane %v326_v60, 2 }
  0xd7   : >> { %v308_v48 = vrot.slane %v307_v45, 1  ;;  %v314_v62 = vadd.f32 %v313_v46, %v312_v59  ;;  %v322_v49 = vrot.slane %v321_v47, 1  ;;  %v328_v50 = vadd.f32 %v327_v61, %v326_v60 }
  0xd9   : >> { %v309_v51 = vadd.f32 %v308_v48, %v307_v45  ;;  %v315_v63 = vrot.slane %v314_v62, 1  ;;  %v323_v52 = vadd.f32 %v322_v49, %v321_v47  ;;  %v329_v0 = vrot.slane %v328_v50, 1 }
  0xdb   : >> { %v316_v12 = vadd.f32 %v315_v63, %v314_v62  ;;  %v330_v41 = vadd.f32 %v329_v0, %v328_v50  ;;  %v1776_v26 = vmin.f32 %v1408_v26, %v309_v51   ;;  %v1778_v28 = vmin.f32 %v1400_v28, %v323_v52  }
  0xdc   : >> { %v1797_v0 = vstv %s1412_s23  ;;  %s2634_s23 = smov %s244_s26 }
  0xdd   : >> { %v1780_v27 = vmin.f32 %v1404_v27, %v316_v12   ;;  %v1782_v29 = vmin.f32 %v1396_v29, %v330_v41   ;;  %vm418_vm10 = vcmp.eq.s32.totalorder %v2444_v2, %v1797_v0  ;;  %vm419_vm11 = vcmp.eq.s32.totalorder %v2443_v6, %v1797_v0  ;;  %v2481_v12 = vld [vmem:[#allocation25_spill] sm:$0xff]  ;;  %v2483_v41 = vld [vmem:[#allocation26_spill] sm:$0xff] }
  0xde   : >> { %vm420_vm12 = vcmp.eq.s32.totalorder %v2442_v7, %v1797_v0  ;;  %vm421_vm13 = vcmp.eq.s32.totalorder %v2441_v8, %v1797_v0  ;;  %vm422_vm14 = vcmp.eq.s32.totalorder %v2440_v9, %v1797_v0  ;;  %vm423_vm15 = vcmp.eq.s32.totalorder %v2439_v10, %v1797_v0 }
  0xdf   : >> { %v335_v13 = vmax.f32 %v1776_v26, %v1780_v27  ;;  %v336_v42 = vmax.f32 %v1778_v28, %v1782_v29  ;;  %vm424_vm0 = vcmp.eq.s32.totalorder %v2438_v11, %v1797_v0  ;;  %v2482_v19 = vmov %v2481_v12  ;;  %v2531_v12 = vld [vmem:[#allocation57_spill] sm:$0xff] }
  0xe0   : >> { %v2484_v20 = vmov %v2483_v41  ;;  %v2532_v41 = vmov %v2477_v21 }
  0xe1   : >> { %v337_v43 = vmax.f32 %v335_v13, %v336_v42  ;;  %v2485_v42 = vld [vmem:[#allocation27_spill] sm:$0xff] }
  0xe2   : >> { %v2486_v22 = vmov %v2485_v42  ;;  %v2535_v42 = vld [vmem:[#allocation56_spill] sm:$0xff] }
  0xe3   : >> { %338 = vmax.xlane.f32.xlu0 %v337_v43  ;;  %v2536_v43 = vld [vmem:[#allocation21_spill] sm:$0xff] }
 0x170   : >> { %v339_v44 = vpop.xlane.xlu0 %338 }
 0x171   : >> { %751 = vpush %v339_v44 }
 0x1a2   : >> { %s752_s24 = spop %751 }
 0x1a3   : >> { %v341_v45 = vstv %s752_s24 }
 0x1a4   : >> { %vm342_vm2 = vcmp.ge.f32.partialorder %v1776_v26, %v341_v45  ;;  %vm343_vm3 = vcmp.ge.f32.partialorder %v1780_v27, %v341_v45  ;;  %vm344_vm4 = vcmp.ge.f32.partialorder %v1778_v28, %v341_v45  ;;  %vm345_vm5 = vcmp.ge.f32.partialorder %v1782_v29, %v341_v45 }
 0x1a5   : >> { %v346_v46 = vsel %vm342_vm2, %v2445_v1, 512  ;;  %v347_v47 = vsel %vm343_vm3, %v2448_v3, 512  ;;  %v348_v48 = vsel %vm344_vm4, %v2447_v4, 512  ;;  %v349_v49 = vsel %vm345_vm5, %v2446_v5, 512 }
 0x1a6   : >> { %vm350_vm6 = vcmp.lt.s32.totalorder %v346_v46, %v347_v47  ;;  %vm352_vm7 = vcmp.lt.s32.totalorder %v348_v48, %v349_v49 }
 0x1a7   : >> { %v351_v50 = vsel %vm350_vm6, %v346_v46, %v347_v47  ;;  %v353_v51 = vsel %vm352_vm7, %v348_v48, %v349_v49  ;;  %v2490_v46 = vld [vmem:[#allocation31_spill] sm:$0xff]  ;;  %v2492_v47 = vld [vmem:[#allocation32_spill] sm:$0xff]  ;;  %v2494_v48 = vld [vmem:[#allocation34_spill] sm:$0xff]  ;;  %v1416_v49 = vmov 0.0  }
 0x1a8   : >> { %vm354_vm8 = vcmp.lt.s32.totalorder %v351_v50, %v353_v51  ;;  %v2491_v23 = vmov %v2490_v46  ;;  %v2493_v24 = vmov %v2492_v47  ;;  %vm445_vm6 = vcmp.eq.s32.totalorder %v2494_v48, %v1797_v0 }
 0x1a9   : >> { %v355_v52 = vsel %vm354_vm8, %v351_v50, %v353_v51 }
 0x1aa   : >> { %v357_v56 = vshra.s32 %v355_v52, 16  ;;  %v356_v58 = vand.u32 65535, %v355_v52 }
 0x1ac   : >> { %v359_v57 = vcvt.s32.f32 %v357_v56  ;;  %v358_v54 = vcvt.s32.f32 %v356_v58  ;;  %v2497_v58 = vld [vmem:[#allocation36_spill] sm:$0xff] }
 0x1ad   : >> { %vm447_vm2 = vcmp.eq.s32.totalorder %v2497_v58, %v1797_v0  ;;  %v2555_v58 = vld [vmem:[#allocation51_spill] sm:$0xff] }
 0x1ae   : >> { %360 = vmin.xlane.f32.xlu0 %v359_v57 }
 0x23b   : >> { %v361_v30 = vpop.xlane.xlu0 %360 }
 0x23c   : >> { %vm362_vm9 = vcmp.eq.f32.partialorder %v359_v57, %v361_v30  ;;  %v367_v55 = vcvt.f32.s32 %v361_v30  ;;  %v2495_v57 = vld [vmem:[#allocation35_spill] sm:$0xff]  ;;  %v2499_v30 = vld [vmem:[#allocation37_spill] sm:$0xff] }
 0x23d   : >> { %v363_v59 = vsel %vm362_vm9, %v358_v54, inf  ;;  %vm446_vm3 = vcmp.eq.s32.totalorder %v2495_v57, %v1797_v0  ;;  %vm448_vm4 = vcmp.eq.s32.totalorder %v2499_v30, %v1797_v0  ;;  %v2500_v54 = vld [vmem:[#allocation38_spill] sm:$0xff]  ;;  %v2558_v30 = vld [vmem:[#allocation50_spill] sm:$0xff] }
 0x23e   : >> { %364 = vmin.xlane.f32.xlu1 %v363_v59  ;;  %v368_v61 = vshll.u32 %v367_v55, 16  ;;  %vm449_vm5 = vcmp.eq.s32.totalorder %v2500_v54, %v1797_v0  ;;  %v2552_v57 = vld [vmem:[#allocation52_spill] sm:$0xff] }
 0x2cb   : >> { %v365_v60 = vpop.xlane.xlu1 %364 }
 0x2cc   : >> { %v366_v62 = vcvt.f32.s32 %v365_v60  ;;  %v2523_v60 = vld [vmem:[#allocation59_spill] sm:$0xff] }
 0x2ce   : >> { %v369_v63 = vadd.s32 %v368_v61, %v366_v62  ;;  %v2524_v61 = vld [vmem:[#allocation18_spill] sm:$0xff]  ;;  %v2527_v62 = vld [vmem:[#allocation58_spill] sm:$0xff] }
 0x2d0   : >> { %753 = vpush %v369_v63  ;;  %v2528_v63 = vld [vmem:[#allocation19_spill] sm:$0xff] }
 0x301   : >> { %s754_s25 = spop %753 }
 0x302   : >> { %v1841_v13 = vstv %s754_s25 }
 0x303   : >> { %vm372_vm7 = vcmp.eq.s32.totalorder %v2445_v1, %v1841_v13  ;;  %vm373_vm8 = vcmp.eq.s32.totalorder %v2448_v3, %v1841_v13  ;;  %vm374_vm9 = vcmp.eq.s32.totalorder %v2447_v4, %v1841_v13  ;;  %vm375_vm1 = vcmp.eq.s32.totalorder %v2446_v5, %v1841_v13 }
 0x304   : >> { %v742_v50 = vsel %vm372_vm7, 1.0, %v1416_v49  ;;  %v743_v51 = vsel %vm373_vm8, 1.0, %v1416_v49  ;;  %v744_v52 = vsel %vm374_vm9, 1.0, %v1416_v49  ;;  %v745_v56 = vsel %vm375_vm1, 1.0, %v1416_v49 }
 0x305   : >> { %v388_v59 = vcombine.low %v742_v50, %v743_v51  ;;  %v389_v55 = vcombine.low %v744_v52, %v745_v56  ;;  %v1878_v31 = vsel %vm418_vm10, %v1841_v13, %v1380_v31   ;;  %v1885_v32 = vsel %vm419_vm11, %v1841_v13, %v1376_v32  }
 0x306   : >> { %2501 = vst [vmem:[#allocation65_spill] sm:$0xff] %v1878_v31  ;;  %2502 = vst [vmem:[#allocation66_spill] sm:$0xff] %v1885_v32  ;;  %v1892_v33 = vsel %vm420_vm12, %v1841_v13, %v1372_v33   ;;  %v1899_v35 = vsel %vm421_vm13, %v1841_v13, %v1368_v35   ;;  %v1906_v36 = vsel %vm422_vm14, %v1841_v13, %v1364_v36   ;;  %vm2521_vm14 = vcmask 1042432  }
 0x307   : >> { %2503 = vst [vmem:[#allocation67_spill] sm:$0xff] %v1892_v33  ;;  %2504 = vst [vmem:[#allocation68_spill] sm:$0xff] %v1899_v35  ;;  %v1913_v37 = vsel %vm423_vm15, %v1841_v13, %v1360_v37   ;;  %v392_v31 = vmul.f32 %v388_v59, %v2431_v40  ;;  %v393_v32 = vmul.f32 %v389_v55, %v2432_v34  ;;  %v2512_v33 = vld [vmem:[#allocation62_spill] sm:$0xff]  ;;  %v2515_v35 = vld [vmem:[#allocation61_spill] sm:$0xff] }
 0x308   : >> { %2505 = vst [vmem:[#allocation69_spill] sm:$0xff] %v1906_v36  ;;  %2506 = vst [vmem:[#allocation70_spill] sm:$0xff] %v1913_v37  ;;  %v1922_v38 = vsel %vm424_vm0, %v1841_v13, %v1356_v38   ;;  %vm2508_vm1 = vcmp.eq.s32.totalorder %v2437_v14, %v1797_v0  ;;  %vm2510_vm10 = vcmp.eq.s32.totalorder %v2436_v15, %v1797_v0  ;;  %v2518_v36 = vld [vmem:[#allocation60_spill] sm:$0xff]  ;;  %v2561_v59 = vld [vmem:[#allocation49_spill] sm:$0xff] }
 0x309   : >> { %2507 = vst [vmem:[#allocation71_spill] sm:$0xff] %v1922_v38  ;;  %v1929_v39 = vsel %vm2508_vm1, %v1841_v13, %v1352_v39   ;;  %v1936_v53 = vsel %vm2510_vm10, %v1841_v13, %v1348_v53   ;;  %vm2513_vm11 = vcmp.eq.s32.totalorder %v2435_v16, %v1797_v0  ;;  %vm2516_vm12 = vcmp.eq.s32.totalorder %v2434_v17, %v1797_v0  ;;  %vm2522_vm15 = vmmov %vm2521_vm14  ;;  %v2562_v55 = vld [vmem:[#allocation28_spill] sm:$0xff] }
 0x30a   : >> { %2509 = vst [vmem:[#allocation72_spill] sm:$0xff] %v1929_v39  ;;  %2511 = vst [vmem:[#allocation73_spill] sm:$0xff] %v1936_v53  ;;  %v1943_v52 = vsel %vm2513_vm11, %v1841_v13, %v2512_v33   ;;  %v1950_v51 = vsel %vm2516_vm12, %v1841_v13, %v2515_v35   ;;  %vm2519_vm13 = vcmp.eq.s32.totalorder %v2433_v18, %v1797_v0  ;;  %v400_v39 = vsel %vm2521_vm14, %v392_v31, 0.0  ;;  %v2569_v35 = vld [vmem:[#allocation47_spill] sm:$0xff] }
 0x30b   : >> { %v2514_v11 = vmov %v1943_v52  ;;  %v2517_v14 = vmov %v1950_v51  ;;  %v1957_v50 = vsel %vm2519_vm13, %v1841_v13, %v2518_v36   ;;  %v396_v37 = vcombine.high %v392_v31, %v392_v31  ;;  %vm2539_vm1 = vmmov %vm2521_vm14  ;;  %v2545_v51 = vld [vmem:[#allocation54_spill] sm:$0xff]  ;;  %v2565_v31 = vld [vmem:[#allocation48_spill] sm:$0xff] }
 0x30c   : >> { %v2520_v15 = vmov %v1957_v50  ;;  %v397_v38 = vcombine.high %v393_v32, %v393_v32  ;;  %v403_v53 = vsel %vm2522_vm15, %v393_v32, 0.0  ;;  %vm2525_vm0 = vcmp.eq.s32.totalorder %v2524_v61, %v1797_v0  ;;  %vm2540_vm10 = vmmov %vm2539_vm1  ;;  %v2566_v32 = vld [vmem:[#allocation29_spill] sm:$0xff]  ;;  %v2570_v36 = vld [vmem:[#allocation30_spill] sm:$0xff] }
 0x30d   : >> { %v1966_v49 = vsel %vm2525_vm0, %v1841_v13, %v2523_v60   ;;  %vm2529_vm7 = vcmp.eq.s32.totalorder %v2528_v63, %v1797_v0  ;;  %vm2533_vm8 = vcmp.eq.s32.totalorder %v2532_v41, %v1797_v0  ;;  %vm2537_vm9 = vcmp.eq.s32.totalorder %v2536_v43, %v1797_v0  ;;  %v2579_v60 = vld [vmem:[#allocation44_spill] sm:$0xff]  ;;  %v2636_v27 = vld [vmem:[#allocation66_spill] sm:$0xff] (%p2116_p4) }
 0x30e   : >> { %v2526_v16 = vmov %v1966_v49  ;;  %v1973_v48 = vsel %vm2529_vm7, %v1841_v13, %v2527_v62   ;;  %v1980_v47 = vsel %vm2533_vm8, %v1841_v13, %v2531_v12   ;;  %v1987_v46 = vsel %vm2537_vm9, %v1841_v13, %v2535_v42   ;;  %v2541_v49 = vld [vmem:[#allocation55_spill] sm:$0xff]  ;;  %v2637_v28 = vld [vmem:[#allocation67_spill] sm:$0xff] (%p2116_p4)  ;;  %v2638_v29 = vld [vmem:[#allocation68_spill] sm:$0xff] (%p2116_p4) }
 0x30f   : >> { %v2530_v17 = vmov %v1973_v48  ;;  %v2534_v18 = vmov %v1980_v47  ;;  %v2538_v34 = vmov %v1987_v46  ;;  %v401_v44 = vsel %vm2539_vm1, %v396_v37, 0.0  ;;  %v2542_v48 = vld [vmem:[#allocation22_spill] sm:$0xff]  ;;  %v2546_v47 = vld [vmem:[#allocation23_spill] sm:$0xff] }
 0x310   : >> { %v405_v45 = vsel %vm2540_vm10, %v397_v38, 0.0  ;;  %vm2543_vm11 = vcmp.eq.s32.totalorder %v2542_v48, %v1797_v0  ;;  %vm2547_vm12 = vcmp.eq.s32.totalorder %v2546_v47, %v1797_v0  ;;  %v402_v56 = vadd.f32 %v401_v44, %v400_v39  ;;  %v2549_v46 = vld [vmem:[#allocation53_spill] sm:$0xff]  ;;  %v2573_v38 = vld [vmem:[#allocation46_spill] sm:$0xff]  ;;  %v2593_v44 = vld [vmem:[#allocation2_spill] sm:$0xff] }
 0x311   : >> { %v1996_v50 = vsel %vm2543_vm11, %v1841_v13, %v2541_v49   ;;  %v2003_v52 = vsel %vm2547_vm12, %v1841_v13, %v2545_v51   ;;  %vm2550_vm13 = vcmp.eq.s32.totalorder %v2430_v25, %v1797_v0  ;;  %vm2553_vm14 = vcmp.eq.s32.totalorder %v2482_v19, %v1797_v0  ;;  %v2576_v39 = vld [vmem:[#allocation45_spill] sm:$0xff]  ;;  %v2594_v49 = vld [vmem:[#allocation4_spill] sm:$0xff]  ;;  %v2595_v48 = vld [vmem:[#allocation64_spill] sm:$0xff] }
 0x312   : >> { %v2544_v40 = vmov %v1996_v50  ;;  %v2548_v21 = vmov %v2003_v52  ;;  %v2010_v43 = vsel %vm2550_vm13, %v1841_v13, %v2549_v46   ;;  %v2017_v42 = vsel %vm2553_vm14, %v1841_v13, %v2552_v57   ;;  %v2597_v50 = vld [vmem:[#allocation63_spill] sm:$0xff] }
 0x313   : >> { %v2551_v5 = vmov %v2010_v43  ;;  %v2554_v1 = vmov %v2017_v42  ;;  %vm2556_vm15 = vcmp.eq.s32.totalorder %v2484_v20, %v1797_v0  ;;  %vm2559_vm0 = vcmp.eq.s32.totalorder %v2486_v22, %v1797_v0 }
 0x314   : >> { %v2024_v41 = vsel %vm2556_vm15, %v1841_v13, %v2555_v58   ;;  %v2031_v54 = vsel %vm2559_vm0, %v1841_v13, %v2558_v30   ;;  %vm2563_vm7 = vcmp.eq.s32.totalorder %v2562_v55, %v1797_v0  ;;  %vm2567_vm8 = vcmp.eq.s32.totalorder %v2566_v32, %v1797_v0  ;;  %v2630_v32 = vld [vmem:[#allocation66_spill] sm:$0xff] }
 0x315   : >> { %v2557_v2 = vmov %v2024_v41  ;;  %v2560_v25 = vmov %v2031_v54  ;;  %v2038_v12 = vsel %vm2563_vm7, %v1841_v13, %v2561_v59   ;;  %v2045_v33 = vsel %vm2567_vm8, %v1841_v13, %v2565_v31   ;;  %v2589_v41 = vld [vmem:[#allocation40_spill] sm:$0xff]  ;;  %v2631_v31 = vld [vmem:[#allocation65_spill] sm:$0xff] }
 0x316   : >> { %v2564_v19 = vmov %v2038_v12  ;;  %v2568_v20 = vmov %v2045_v33  ;;  %vm2571_vm9 = vcmp.eq.s32.totalorder %v2570_v36, %v1797_v0  ;;  %v404_v37 = vadd.f32 %v403_v53, %v402_v56  ;;  %v2582_v53 = vld [vmem:[#allocation43_spill] sm:$0xff]  ;;  %v2627_v36 = vld [vmem:[#allocation69_spill] sm:$0xff]  ;;  %v2629_v33 = vld [vmem:[#allocation67_spill] sm:$0xff] }
 0x317   : >> { %v2052_v63 = vsel %vm2571_vm9, %v1841_v13, %v2569_v35   ;;  %vm2574_vm1 = vcmp.eq.s32.totalorder %v2491_v23, %v1797_v0  ;;  %vm2577_vm10 = vcmp.eq.s32.totalorder %v2493_v24, %v1797_v0  ;;  %v2073_v60 = vsel %vm445_vm6, %v1841_v13, %v2579_v60   ;;  %v2628_v35 = vld [vmem:[#allocation68_spill] sm:$0xff] }
 0x318   : >> { %v2572_v22 = vmov %v2052_v63  ;;  %v2059_v62 = vsel %vm2574_vm1, %v1841_v13, %v2573_v38   ;;  %v2066_v61 = vsel %vm2577_vm10, %v1841_v13, %v2576_v39   ;;  %v2581_v8 = vmov %v2073_v60  ;;  %v2624_v39 = vld [vmem:[#allocation72_spill] sm:$0xff]  ;;  %v2625_v38 = vld [vmem:[#allocation71_spill] sm:$0xff] }
 0x319   : >> { %v2575_v6 = vmov %v2059_v62  ;;  %v2578_v7 = vmov %v2066_v61  ;;  %v2080_v59 = vsel %vm446_vm3, %v1841_v13, %v2582_v53   ;;  %v2584_v62 = vld [vmem:[#allocation42_spill] sm:$0xff]  ;;  %v2586_v61 = vld [vmem:[#allocation41_spill] sm:$0xff]  ;;  %v2101_v56 = vsel %vm449_vm5, %v1841_v13, %v2589_v41  }
 0x31a   : >> { %v2583_v23 = vmov %v2080_v59  ;;  %v2087_v58 = vsel %vm447_vm2, %v1841_v13, %v2584_v62   ;;  %v2094_v57 = vsel %vm448_vm4, %v1841_v13, %v2586_v61   ;;  %2591 = vst [vmem:[#allocation74_spill] sm:$0xff] %v2101_v56  ;;  %v2592_v3 = vmov %v2101_v56  ;;  %v2623_v53 = vld [vmem:[#allocation73_spill] sm:$0xff] }
 0x31b   : >> { %v2585_v24 = vmov %v2087_v58  ;;  %v2588_v9 = vmov %v2094_v57  ;;  %v406_v43 = vadd.f32 %v405_v45, %v404_v37  ;;  %vm410_vm2 = vcmp.eq.s32.totalorder %v2593_v44, %v1797_v0  ;;  %v2626_v37 = vld [vmem:[#allocation70_spill] sm:$0xff] }
 0x31c   : >> { %vm411_vm3 = vcmp.eq.s32.totalorder %v2594_v49, %v1797_v0  ;;  %v2600_v56 = vmov %v2592_v3  ;;  %v2601_v57 = vmov %v2588_v9  ;;  %v2602_v58 = vmov %v2585_v24  ;;  %v2635_v3 = vld [vmem:[#allocation65_spill] sm:$0xff] (%p2116_p4) }
 0x31d   : >> { %407 = vadd.xlane.f32.xlu1 %v406_v43  ;;  %v2603_v59 = vmov %v2583_v23  ;;  %v2604_v60 = vmov %v2581_v8  ;;  %v2605_v61 = vmov %v2578_v7  ;;  %v2606_v62 = vmov %v2575_v6 }
 0x31e   : >> { %v2607_v63 = vmov %v2572_v22  ;;  %v2608_v0 = vmov %v2568_v20  ;;  %v2609_v12 = vmov %v2564_v19  ;;  %v2610_v13 = vmov %v2560_v25 }
 0x31f   : >> { %v2611_v41 = vmov %v2557_v2  ;;  %v2612_v42 = vmov %v2554_v1  ;;  %v2613_v43 = vmov %v2551_v5  ;;  %v2614_v44 = vmov %v2548_v21  ;;  %v2639_v0 = vld [vmem:[#allocation69_spill] sm:$0xff] (%p2116_p4) }
 0x320   : >> { %v2615_v45 = vmov %v2544_v40  ;;  %v2616_v46 = vmov %v2538_v34  ;;  %v2617_v47 = vmov %v2534_v18  ;;  %v2619_v49 = vmov %v2526_v16  ;;  %v2643_v13 = vld [vmem:[#allocation73_spill] sm:$0xff] (%p2116_p4) }
 0x321   : >> { %v2621_v51 = vmov %v2517_v14  ;;  %v2622_v52 = vmov %v2514_v11  ;;  %vm487_vm4 = vcmask (%p2116_p4), 7168  }
 0x322   : > { %488 = vst.msk [vmem:[%s1483_s18] sm:$0xff] (%p2116_p4), %vm487_vm4, %v2635_v3  ;;  %489 = vst.msk [vmem:[%s1483_s18 + $0x8] sm:$0xff] (%p2116_p4), %vm487_vm4, %v2636_v27  ;;  %v2641_v3 = vld [vmem:[#allocation71_spill] sm:$0xff] (%p2116_p4) }
 0x323   : > { %490 = vst.msk [vmem:[%s1483_s18 + $0x10] sm:$0xff] (%p2116_p4), %vm487_vm4, %v2637_v28  ;;  %491 = vst.msk [vmem:[%s1483_s18 + $0x18] sm:$0xff] (%p2116_p4), %vm487_vm4, %v2638_v29 }
 0x324   : > { %492 = vst.msk [vmem:[%s1483_s18 + $0x20] sm:$0xff] (%p2116_p4), %vm487_vm4, %v2639_v0  ;;  %494 = vst.msk [vmem:[%s1483_s18 + $0x30] sm:$0xff] (%p2116_p4), %vm487_vm4, %v2641_v3 }
 0x325   : > { %496 = vst.msk [vmem:[%s1483_s18 + $0x40] sm:$0xff] (%p2116_p4), %vm487_vm4, %v2643_v13  ;;  %497 = vst.msk [vmem:[%s1483_s18 + $0x48] sm:$0xff] (%p2116_p4), %vm487_vm4, %v2514_v11 }
 0x326   : > { %498 = vst.msk [vmem:[%s1483_s18 + $0x50] sm:$0xff] (%p2116_p4), %vm487_vm4, %v2517_v14  ;;  %499 = vst.msk [vmem:[%s1483_s18 + $0x58] sm:$0xff] (%p2116_p4), %vm487_vm4, %v2520_v15 }
 0x327   : > { %500 = vst.msk [vmem:[%s1483_s18 + $0x60] sm:$0xff] (%p2116_p4), %vm487_vm4, %v2526_v16  ;;  %501 = vst.msk [vmem:[%s1483_s18 + $0x68] sm:$0xff] (%p2116_p4), %vm487_vm4, %v2530_v17 }
 0x328   : > { %502 = vst.msk [vmem:[%s1483_s18 + $0x70] sm:$0xff] (%p2116_p4), %vm487_vm4, %v2534_v18  ;;  %503 = vst.msk [vmem:[%s1483_s18 + $0x78] sm:$0xff] (%p2116_p4), %vm487_vm4, %v2538_v34 }
 0x329   : > { %504 = vst.msk [vmem:[%s1483_s18 + $0x80] sm:$0xff] (%p2116_p4), %vm487_vm4, %v2544_v40  ;;  %505 = vst.msk [vmem:[%s1483_s18 + $0x88] sm:$0xff] (%p2116_p4), %vm487_vm4, %v2548_v21 }
 0x32a   : > { %506 = vst.msk [vmem:[%s1483_s18 + $0x90] sm:$0xff] (%p2116_p4), %vm487_vm4, %v2551_v5  ;;  %507 = vst.msk [vmem:[%s1483_s18 + $0x98] sm:$0xff] (%p2116_p4), %vm487_vm4, %v2554_v1  ;;  %v2644_v1 = vld [vmem:[#allocation74_spill] sm:$0xff] (%p2116_p4) }
 0x32b   : > { %508 = vst.msk [vmem:[%s1483_s18 + $0xa0] sm:$0xff] (%p2116_p4), %vm487_vm4, %v2557_v2  ;;  %509 = vst.msk [vmem:[%s1483_s18 + $0xa8] sm:$0xff] (%p2116_p4), %vm487_vm4, %v2560_v25 }
 0x32c   : > { %510 = vst.msk [vmem:[%s1483_s18 + $0xb0] sm:$0xff] (%p2116_p4), %vm487_vm4, %v2564_v19  ;;  %511 = vst.msk [vmem:[%s1483_s18 + $0xb8] sm:$0xff] (%p2116_p4), %vm487_vm4, %v2568_v20 }
 0x32d   : > { %512 = vst.msk [vmem:[%s1483_s18 + $0xc0] sm:$0xff] (%p2116_p4), %vm487_vm4, %v2572_v22  ;;  %513 = vst.msk [vmem:[%s1483_s18 + $0xc8] sm:$0xff] (%p2116_p4), %vm487_vm4, %v2575_v6 }
 0x32e   : > { %514 = vst.msk [vmem:[%s1483_s18 + $0xd0] sm:$0xff] (%p2116_p4), %vm487_vm4, %v2578_v7  ;;  %515 = vst.msk [vmem:[%s1483_s18 + $0xd8] sm:$0xff] (%p2116_p4), %vm487_vm4, %v2581_v8 }
 0x32f   : > { %516 = vst.msk [vmem:[%s1483_s18 + $0xe0] sm:$0xff] (%p2116_p4), %vm487_vm4, %v2583_v23  ;;  %517 = vst.msk [vmem:[%s1483_s18 + $0xe8] sm:$0xff] (%p2116_p4), %vm487_vm4, %v2585_v24 }
 0x330   : > { %518 = vst.msk [vmem:[%s1483_s18 + $0xf0] sm:$0xff] (%p2116_p4), %vm487_vm4, %v2588_v9  ;;  %519 = vst.msk [vmem:[%s1483_s18 + $0xf8] sm:$0xff] (%p2116_p4), %vm487_vm4, %v2644_v1 }
 0x3a7   : > { %243 = sbr.rel (!%p2116_p4) target bundleno = 184 (0xb8), region = 73 }
 0x3aa   : >> { %v408_v54 = vpop.xlane.xlu1 %407  }
 0x3ab   : >> { %v2108_v55 = vsel %vm410_vm2, %v408_v54, %v2595_v48   ;;  %v2111_v30 = vsel %vm411_vm3, %v408_v54, %v2597_v50   ;;  %v2618_v48 = vmov %v2530_v17  ;;  %v2620_v50 = vmov %v2520_v15 }
 0x3ac   : >> { %v2596_v4 = vmov %v2108_v55  ;;  %v2598_v10 = vmov %v2111_v30 }
 0x3ad   : >> { %v2632_v30 = vmov %v2598_v10  ;;  %v2633_v55 = vmov %v2596_v4  ;;  %v484_v26 = vcombine.low (%p2116_p4), %v2596_v4, %v2598_v10  ;;  %v2640_v4 = vld [vmem:[#allocation70_spill] sm:$0xff] (%p2116_p4)  ;;  %v2642_v10 = vld [vmem:[#allocation72_spill] sm:$0xff] (%p2116_p4) }
 0x3ae   : > { %493 = vst.msk [vmem:[%s1483_s18 + $0x28] sm:$0xff] %vm487_vm4, %v2640_v4  ;;  %495 = vst.msk [vmem:[%s1483_s18 + $0x38] sm:$0xff] %vm487_vm4, %v2642_v10 }
 0x3af   : > { %486 = vst [vmem:[%s1462_s14] sm:$0x77] %v484_v26 }
 0x3b0 PF: > { %s13_s9 = sadd.s32 1, %s1252_s9  }
 0x3b1   : > { %p10_p5 = scmp.ge.s32.totalorder %s13_s9, 4  }
 0x3b3   :  { %12 = sbr.rel (!%p10_p5) target bundleno = 1 (0x1), region = 84 }

</bundles_post_ra>
